<compile_context>
chip_gen: v7x
topology: tpu7x:2x2x1
jax: 0.10.0
libtpu: 0.0.40
codegen_flags: <defaults>
</compile_context>

<pallas_src>
import functools

import jax
import jax.numpy as jnp
from jax.experimental import pallas as pl
from jax.experimental.pallas import tpu as pltpu


def _round_up(x, m):
    return (x + m - 1) // m * m


def _patch_embed_kernel(x_ref, w_ref, b_ref, o_ref):
    # x_ref: [TM, K_pad]    compute dtype (patch rows)
    # w_ref: [K_pad, E_pad] compute dtype (resident projection matrix)
    # b_ref: [1, E_pad]     f32 (resident bias)
    # o_ref: [TM, E_pad]    out dtype
    acc = jnp.dot(x_ref[...], w_ref[...], preferred_element_type=jnp.float32)
    o_ref[...] = (acc + b_ref[...]).astype(o_ref.dtype)


def patch_embed_forward(x, weight, bias, patch_size, *,
                        out_dtype=jnp.bfloat16,
                        compute_dtype=jnp.bfloat16,
                        tm_max=1024):
    """Forward pass equivalent to PatchEmbed.forward.

    Args:
      x:      [B, C, H, W]  (NCHW, like PyTorch)
      weight: [E, C, p, p]  (PyTorch Conv2d weight layout)
      bias:   [E]
      patch_size: int p
      out_dtype: output dtype (default bf16; jnp.float32 for f32 parity)
      compute_dtype: matmul operand dtype (accumulation is always f32)

    Returns:
      [B, n_patches, E] in out_dtype
    """
    B, C, H, W = x.shape
    E = weight.shape[0]
    p = patch_size
    hp, wp = H // p, W // p
    n_patches = hp * wp
    M = B * n_patches
    K = C * p * p

    # --- patch extraction (same reduction order as Conv2d: (C, ph, pw)) ---
    # Cast first so the transpose copy moves narrow (bf16) elements.
    patches = x.astype(compute_dtype).reshape(B, C, hp, p, wp, p)
    patches = patches.transpose(0, 2, 4, 1, 3, 5).reshape(M, K)

    # Conv weight [E, C, p, p] -> projection matrix [K, E]
    w_mat = weight.reshape(E, K).T.astype(compute_dtype)
    b_mat = bias.astype(jnp.float32).reshape(1, E)

    # --- lane-dense (128-aligned) K / E; no M padding ---
    K_pad = _round_up(K, 128)
    E_pad = _round_up(E, 128)
    if K_pad != K:
        patches = jnp.pad(patches, ((0, 0), (0, K_pad - K)))
        w_mat = jnp.pad(w_mat, ((0, K_pad - K), (0, 0)))
    if E_pad != E:
        w_mat = jnp.pad(w_mat, ((0, 0), (0, E_pad - E)))
        b_mat = jnp.pad(b_mat, ((0, 0), (0, E_pad - E)))

    # Row tile: multiple of 256 (bf16 packing + MXU width), capped so small-M
    # calls still get >=4 grid tiles where possible, never larger than the
    # (16-rounded) row count.
    TM = min(tm_max, _round_up(pl.cdiv(M, 4), 256))
    TM = min(TM, _round_up(M, 16))
    grid = (pl.cdiv(M, TM),)

    in_bytes = jnp.dtype(compute_dtype).itemsize
    out_bytes = jnp.dtype(out_dtype).itemsize

    # Double-buffered tile footprint + resident weight/bias, with slack.
    footprint = (2 * TM * K_pad * in_bytes          # patch-row tiles (in)
                 + 2 * K_pad * E_pad * in_bytes     # weight (resident)
                 + 2 * 8 * E_pad * 4                # bias (resident, padded)
                 + 2 * TM * E_pad * out_bytes)      # output tiles
    vmem_limit = int(min(48 * 1024 * 1024,
                         max(16 * 1024 * 1024, 2 * footprint)))

    cost = pl.CostEstimate(
        flops=2 * M * K_pad * E_pad,
        transcendentals=0,
        bytes_accessed=(M * K_pad * in_bytes        # patches
                        + K_pad * E_pad * in_bytes  # weight
                        + E_pad * 4                 # bias
                        + M * E_pad * out_bytes),   # output
    )

    out = pl.pallas_call(
        _patch_embed_kernel,
        out_shape=jax.ShapeDtypeStruct((M, E_pad), out_dtype),
        grid=grid,
        in_specs=[
            # If a trace shows exposed input DMA on v6e, consider
            # pipeline_mode=pl.Buffered(3) on this spec (~1.5 MiB extra VMEM).
            pl.BlockSpec((TM, K_pad), lambda i: (i, 0)),     # patch rows
            pl.BlockSpec((K_pad, E_pad), lambda i: (0, 0)),  # resident weight
            pl.BlockSpec((1, E_pad), lambda i: (0, 0)),      # resident bias
        ],
        out_specs=pl.BlockSpec((TM, E_pad), lambda i: (i, 0)),
        compiler_params=pltpu.CompilerParams(
            dimension_semantics=("parallel",),
            vmem_limit_bytes=vmem_limit,
        ),
        cost_estimate=cost,
    )(patches, w_mat, b_mat)

    if E_pad != E:
        out = out[:, :E]
    return out.reshape(B, n_patches, E)


if __name__ == "__main__":
    # Small, deterministic configuration.
    B, C, IMG, PATCH, EMBED = 2, 4, 16, 4, 32
    n_patches = (IMG // PATCH) ** 2  # 16

    key = jax.random.PRNGKey(0)
    kx, kw, kb = jax.random.split(key, 3)

    x = jax.random.normal(kx, (B, C, IMG, IMG), dtype=jnp.float32)
    # Deterministic synthetic Conv2d parameters (shapes match nn.Conv2d(C, E, p, p)).
    weight = jax.random.normal(kw, (EMBED, C, PATCH, PATCH), dtype=jnp.float32) * 0.02
    bias = jax.random.normal(kb, (EMBED,), dtype=jnp.float32) * 0.02

    fwd = jax.jit(functools.partial(patch_embed_forward, patch_size=PATCH))
    out = jax.block_until_ready(fwd(x, weight, bias))

    # Sanity check against a pure-JAX reference (conv with stride == kernel).
    ref = jax.lax.conv_general_dilated(
        x, weight, window_strides=(PATCH, PATCH), padding="VALID",
        dimension_numbers=("NCHW", "OIHW", "NCHW"))
    ref = ref + bias.reshape(1, EMBED, 1, 1)
    ref = ref.reshape(B, EMBED, n_patches).transpose(0, 2, 1)

    assert out.shape == (B, n_patches, EMBED), out.shape
    assert out.dtype == jnp.bfloat16, out.dtype
    # bf16 operands + bf16 output -> tolerance loosened vs. f32 Conv2d.
    err = float(jnp.max(jnp.abs(out.astype(jnp.float32) - ref)))
    assert err < 3e-2, err

    print("KERNEL_OK")
</pallas_src>

<mosaic_0001>
module attributes {stable_mosaic.version = 11 : i64} {
  func.func @_patch_embed_kernel(%arg0: i32, %arg1: memref<32x128xbf16, #tpu.memory_space<vmem>>, %arg2: memref<128x128xbf16, #tpu.memory_space<vmem>>, %arg3: memref<1x128xf32, #tpu.memory_space<vmem>>, %arg4: memref<32x128xbf16, #tpu.memory_space<vmem>>) attributes {dimension_semantics = [#tpu.dimension_semantics<parallel>], iteration_bounds = array<i64: 1>, scalar_prefetch = 0 : i64, scratch_operands = 0 : i64, tpu.core_type = #tpu.core_type<tc>, window_params = [{transform_indices = @transform_0, window_bounds = array<i64: 32, 128>}, {pipeline_mode = #tpu.pipeline_mode<synchronous>, transform_indices = @transform_1, window_bounds = array<i64: 128, 128>}, {pipeline_mode = #tpu.pipeline_mode<synchronous>, transform_indices = @transform_2, window_bounds = array<i64: 1, 128>}, {transform_indices = @transform_3, window_bounds = array<i64: 32, 128>}]} {
    %c0 = arith.constant 0 : index
    %c0_0 = arith.constant 0 : index
    %0 = vector.load %arg1[%c0, %c0_0] : memref<32x128xbf16, #tpu.memory_space<vmem>>, vector<32x128xbf16>
    %c0_1 = arith.constant 0 : index
    %c0_2 = arith.constant 0 : index
    %1 = vector.load %arg2[%c0_1, %c0_2] : memref<128x128xbf16, #tpu.memory_space<vmem>>, vector<128x128xbf16>
    %cst = arith.constant dense<0.000000e+00> : vector<32x128xf32>
    %2 = tpu.matmul %0, %1, %cst {dimension_numbers = #tpu.dot_dimension_numbers<[1], [0], [0], [1], [0, 0, 1, 1], [], []>} : vector<32x128xbf16>, vector<128x128xbf16>, vector<32x128xf32> -> vector<32x128xf32>
    %c0_3 = arith.constant 0 : index
    %c0_4 = arith.constant 0 : index
    %3 = vector.load %arg3[%c0_3, %c0_4] : memref<1x128xf32, #tpu.memory_space<vmem>>, vector<1x128xf32>
    %4 = vector.broadcast %3 : vector<1x128xf32> to vector<32x128xf32>
    %5 = arith.addf %2, %4 : vector<32x128xf32>
    %6 = arith.truncf %5 : vector<32x128xf32> to vector<32x128xbf16>
    %c0_5 = arith.constant 0 : index
    %c0_6 = arith.constant 0 : index
    %7 = vector.load %arg4[%c0_5, %c0_6] : memref<32x128xbf16, #tpu.memory_space<vmem>>, vector<32x128xbf16>
    tpu.vector_store %arg4[%c0_5, %c0_6], %6 {strides = array<i32>} : memref<32x128xbf16, #tpu.memory_space<vmem>>, vector<32x128xbf16>,
    return
  }
  func.func @transform_0(%arg0: i32) -> (i32, i32) {
    %c0_i32 = arith.constant 0 : i32
    %c0_i32_0 = arith.constant 0 : i32
    return %arg0, %c0_i32 : i32, i32
  }
  func.func @transform_1(%arg0: i32) -> (i32, i32) {
    %c0_i32 = arith.constant 0 : i32
    %c0_i32_0 = arith.constant 0 : i32
    %c0_i32_1 = arith.constant 0 : i32
    return %c0_i32, %c0_i32_0 : i32, i32
  }
  func.func @transform_2(%arg0: i32) -> (i32, i32) {
    %c0_i32 = arith.constant 0 : i32
    %c0_i32_0 = arith.constant 0 : i32
    %c0_i32_1 = arith.constant 0 : i32
    return %c0_i32, %c0_i32_0 : i32, i32
  }
  func.func @transform_3(%arg0: i32) -> (i32, i32) {
    %c0_i32 = arith.constant 0 : i32
    %c0_i32_0 = arith.constant 0 : i32
    return %arg0, %c0_i32 : i32, i32
  }
}

</mosaic_0001>

<bundles_post_ra>
// kernel: patch_embed_forward.1
= control target key start
LH: loop header
LB: loop body
LE: loop exit
PB: predicated region body
PF: predicated region fallthrough
CT: control target
= control target key end

     0   :  { %s353_s0 = inlined_call_operand.vmem [shape: bf16[32,128], index: 0, kind: input, shape index: {}]   ;;  %s354_s1 = inlined_call_operand.vmem [shape: bf16[128,128], index: 1, kind: input, shape index: {}]   ;;  %s355_s2 = inlined_call_operand.vmem [shape: f32[1,128], index: 2, kind: input, shape index: {}]   ;;  %s356_s3 = inlined_call_operand.hbm [shape: bf16[32,128], index: 3, kind: output, shape index: {}]  }
   0x1   :  { %v251_v0 = vld [vmem:[%s354_s1] sm:$0xff]   ;;  %v252_v1 = vld [vmem:[%s354_s1 + $0x8] sm:$0xff]   ;;  %v253_v2 = vld [vmem:[%s354_s1 + $0x10] sm:$0xff]  }
   0x2   :  { %228 = vmatprep.subr.bf16.mxu0 %v251_v0  ;;  %v254_v3 = vld [vmem:[%s354_s1 + $0x18] sm:$0xff]   ;;  %v259_v4 = vld [vmem:[%s353_s0] sm:$0xff]  }
   0x3   :  { %229 = vmatpush3.bf16.msra.mxu0 %v251_v0  ;;  %244 = vmatprep.mubr.bf16.mxu0 %v259_v4 }
   0x4   :  { %230 = vmatprep.subr.bf16.mxu0 %v252_v1 }
   0x7   :  { %231 = vmatpush3.bf16.msra.mxu0 %v252_v1 }
   0x8   :  { %232 = vmatprep.subr.bf16.mxu0 %v253_v2 }
   0x9   :  { %8 = vsyncpa [#allocation3], 0  ;;  %v255_v5 = vld [vmem:[%s354_s1 + $0x20] sm:$0xff]   ;;  %v256_v6 = vld [vmem:[%s354_s1 + $0x28] sm:$0xff]   ;;  %s285_s7 = smov [#allocation2]  }
   0xa   :  { %v257_v7 = vld [vmem:[%s354_s1 + $0x30] sm:$0xff]   ;;  %v258_v8 = vld [vmem:[%s354_s1 + $0x38] sm:$0xff]   ;;  %v260_v9 = vld [vmem:[%s353_s0 + $0x8] sm:$0xff]   ;;  %s177_s8 = sshll.u32 %s285_s7, 4  ;;  %s178_s8 = int_to_ptr.vmem [resolvable:$true] %s177_s8 }
   0xb   :  { %233 = vmatpush3.bf16.msra.mxu0 %v253_v2  ;;  %v188_v11 = vld [vmem:[%s355_s2] ss:$0 sm:$0xff]  ;;  %s261_s0 = scalar_lea.vmem %s178_s8, 256  ;;  %p266_p1 = scmp.lt.s32.totalorder %s178_s8, %s178_s8 }
   0xc   :  { %234 = vmatprep.subr.bf16.mxu0 %v254_v3  ;;  %p262_p0 = scmp.ne.s32.totalorder %s178_s8, %s261_s0  ;;  %p267_p2 = scmp.lt.s32.totalorder %s261_s0, %s261_s0 }
   0xe   :  { %p268_p3 = por %p267_p2, %p266_p1 }
   0xf   :  { %235 = vmatpush3.bf16.msra.mxu0 %v254_v3 }
  0x10   :  { %236 = vmatprep.subr.bf16.mxu0 %v255_v5  ;;  %p269_p4 = pnand %p268_p3, %p262_p0 }
  0x13   :  { %237 = vmatpush3.bf16.msra.mxu0 %v255_v5 }
  0x14   :  { %238 = vmatprep.subr.bf16.mxu0 %v256_v6 }
  0x17   :  { %239 = vmatpush3.bf16.msra.mxu0 %v256_v6 }
  0x18   :  { %240 = vmatprep.subr.bf16.mxu0 %v257_v7 }
  0x1b   :  { %241 = vmatpush3.bf16.msra.mxu0 %v257_v7 }
  0x1c   :  { %242 = vmatprep.subr.bf16.mxu0 %v258_v8 }
  0x1f   :  { %243 = vmatpush3.bf16.msra.mxu0 %v258_v8 }
  0x22   :  { %245 = vmatmul.mubr.bf16.vlgmr.msra.gmra.mrb[0].mxu0 %v260_v9 }
  0xf5   :  { %v246_v10 = vpop.f32.mrb[0].mxu0 }
  0xf6   :  { %v137_v12 = vpop.f32.mrb[1].mxu0  ;;  %v146_v14 = vadd.f32 %v246_v10, %v188_v11 }
  0xf7   :  { %v247_v13 = vpop.f32.mrb[2].mxu0  ;;  %v138_v17 = vadd.f32 %v188_v11, %v137_v12 }
  0xf8   :  { %v149_v15 = vadd.f32 %v247_v13, %v188_v11  ;;  %v140_v16 = vpop.f32.mrb[3].mxu0 }
  0xf9   :  { %v141_v18 = vadd.f32 %v188_v11, %v140_v16 }
  0xfa   :  { %v215_v19 = vpack.c.bf16 %v149_v15, %v146_v14 }
  0xfb   :  { %v210_v20 = vpack.c.bf16 %v141_v18, %v138_v17 }
  0xfc   :  { %217 = vst [vmem:[#allocation2 + $0x8] sm:$0xff] %v215_v19  }
  0xfd   :  { %211 = vst [vmem:[#allocation2] sm:$0xff] %v210_v20  }
  0xfe   :  { %272 = shalt.err (!%p269_p4)
}
  0xff   :  { %s273_s9 = scalar_lea.hbm %s356_s3, 256 }
 0x100   :  { %p274_p5 = scmp.ne.s32.totalorder %s356_s3, %s273_s9  ;;  %p277_p6 = scmp.lt.u32.totalorder %s273_s9, %s356_s3 }
 0x102   :  { %p279_p7 = pnand %p277_p6, %p274_p5 }
 0x104   :  { %282 = shalt.err (!%p279_p7)
}
 0x105   :  { %s286_s14 = smov 64   ;;  %s287_s15 = smov 4  }
 0x106   :  { %183 = dma.vmem_to_hbm [thread:$0]  %s178_s8, 256, %s356_s3, [#allocation3], %s286_s14, %s286_s14, %s287_s15  }
 0x107   :  { %283 = dma.done.wait [#allocation3], 256  }
 0x108   :  { %284 = vsyncadd [#allocation3], 4294967040 }
 0x109   :  { %187 = vsyncpa [#allocation3], 1 }

</bundles_post_ra>
